<compile_context>
chip_gen: v7x
topology: tpu7x:2x2x1
jax: 0.10.0
libtpu: 0.0.40
codegen_flags: <defaults>
</compile_context>

<pallas_src>
import functools

import numpy as np
import jax
import jax.numpy as jnp
from jax.experimental import pallas as pl
from jax.experimental.pallas import tpu as pltpu


def _round_up(v, m):
    return ((v + m - 1) // m) * m


def _overlap_fused_kernel(x_ref, w_ref, b_ref, out_ref):
    # x_ref:   (TM, D)        proposal features (f32 or bf16)
    # w_ref:   (D, OUT_PAD)   fused weight [prob | pred | zero-pad], resident
    # b_ref:   (1, OUT_PAD)   fused bias (f32), resident
    # out_ref: (TM, OUT_PAD)  fused output [prob logit | deltas | pad], f32
    y = jnp.dot(x_ref[...], w_ref[...], preferred_element_type=jnp.float32)
    out_ref[...] = (y + b_ref[...]).astype(out_ref.dtype)


def prepare_overlap_params(w_prob, b_prob, w_pred, b_pred, dtype=jnp.float32):
    """One-time parameter prep (hoisted out of the per-call path).

    Args (PyTorch nn.Linear layout):
      w_prob: (1, D), b_prob: (1,), w_pred: (box_dim, D), b_pred: (box_dim,)
      dtype:  compute dtype for the fused weight (f32 or bf16).
    Returns:
      w_fused: (D, OUT_PAD) dtype, b_fused: (1, OUT_PAD) f32, box_dim: int
    """
    box_dim = int(w_pred.shape[0])
    d = int(w_prob.shape[1])
    out_cols = 1 + box_dim
    out_pad = max(8, _round_up(out_cols, 8))

    w_fused = jnp.zeros((d, out_pad), dtype=jnp.float32)
    w_fused = w_fused.at[:, 0:1].set(jnp.transpose(w_prob).astype(jnp.float32))
    w_fused = w_fused.at[:, 1:out_cols].set(jnp.transpose(w_pred).astype(jnp.float32))

    b_fused = jnp.zeros((1, out_pad), dtype=jnp.float32)
    b_fused = b_fused.at[0, 0:1].set(b_prob.astype(jnp.float32))
    b_fused = b_fused.at[0, 1:out_cols].set(b_pred.astype(jnp.float32))
    return w_fused.astype(dtype), b_fused, box_dim


def _choose_tm(n, d, itemsize):
    """Row-tile size.  Two (TM, D) x tiles fit ~20 MiB (double-buffered
    pipeline within every generation's scoped VMEM); for N large enough the
    grid gets >= 2 steps so v7x's two TensorCores both engage; TM never
    exceeds N (last block may be ragged, handled by Pallas)."""
    align = 16 if itemsize < 4 else 8  # bf16 sublane packing wants 16
    if n < align:
        return max(n, 1)               # block == full array dim
    budget = 20 << 20
    tm = budget // (2 * max(d, 1) * itemsize)
    tm = int(min(2048, max(align, (tm // align) * align)))
    if n >= 4 * align:
        # ensure >= 2 grid steps so dimension_semantics=("parallel",) splits
        # work across both v7x TensorCores
        tm = min(tm, _round_up(pl.cdiv(n, 2), align))
    tm = min(tm, (n // align) * align)
    return int(max(align, tm))


def _vmem_limit_bytes(tm, d, out_pad, itemsize):
    # double-buffered x + out tiles, resident weight/bias (conservatively
    # counted double-buffered), plus compiler scratch headroom.
    est = 2 * tm * d * itemsize
    est += 2 * tm * out_pad * 4
    est += 2 * (d * out_pad * itemsize + out_pad * 4)
    est += 8 << 20
    try:
        phys = int(pltpu.get_tpu_info().vmem_capacity_bytes)
    except Exception:
        phys = 64 << 20                # conservative (v7x per-TC VMEM)
    cap = (phys * 72) // 100           # ~46 MiB on v7x, ~92 MiB on v5e/v6e
    return int(min(max(32 << 20, est), cap))


@functools.partial(jax.jit, static_argnames=("box_dim", "sigmoid_on"))
def overlap_forward(x, w_fused, b_fused, *, box_dim, sigmoid_on=True):
    """Fused overlap head forward.

    Args:
      x: (N, C, H, W) or (N, D); f32 or bf16 (matched to w_fused.dtype).
    Returns:
      probs:  (N, 1)        sigmoid(x @ Wp^T + bp)  (raw logits if not sigmoid_on)
      deltas: (N, box_dim)  x @ Wd^T + bd
    """
    if x.ndim > 2:
        x = x.reshape(x.shape[0], -1)  # torch.flatten(x, start_dim=1)
    compute_dtype = w_fused.dtype
    if x.dtype != compute_dtype:
        x = x.astype(compute_dtype)

    n, d = x.shape
    out_pad = int(w_fused.shape[1])
    itemsize = jnp.dtype(compute_dtype).itemsize
    tm = _choose_tm(n, d, itemsize)
    grid = (pl.cdiv(n, tm),)           # no host-side padding of x

    out = pl.pallas_call(
        _overlap_fused_kernel,
        out_shape=jax.ShapeDtypeStruct((n, out_pad), jnp.float32),
        grid=grid,
        in_specs=[
            pl.BlockSpec((tm, d), lambda i: (i, 0)),         # x: tiled over N
            pl.BlockSpec((d, out_pad), lambda i: (0, 0)),    # fused weight: resident
            pl.BlockSpec((1, out_pad), lambda i: (0, 0)),    # fused bias: resident
        ],
        out_specs=pl.BlockSpec((tm, out_pad), lambda i: (i, 0)),
        compiler_params=pltpu.CompilerParams(
            dimension_semantics=("parallel",),               # shard N across TCs on v7x
            vmem_limit_bytes=_vmem_limit_bytes(tm, d, out_pad, itemsize),
        ),
    )(x, w_fused, b_fused)

    probs = out[:, 0:1]
    if sigmoid_on:
        probs = jax.nn.sigmoid(probs)  # tiny (N,1) epilogue outside the kernel
    deltas = out[:, 1:1 + box_dim]
    return probs, deltas


class OverlapHead:
    """JAX/Pallas equivalent of OverlapOutputLayers.forward with the fused
    parameters prepared ONCE at construction (not rebuilt per call)."""

    def __init__(self, w_prob, b_prob, w_pred, b_pred, sigmoid_on=True,
                 dtype=jnp.float32):
        self.w_fused, self.b_fused, self.box_dim = prepare_overlap_params(
            w_prob, b_prob, w_pred, b_pred, dtype=dtype)
        self.sigmoid_on = bool(sigmoid_on)

    def __call__(self, x):
        return overlap_forward(x, self.w_fused, self.b_fused,
                               box_dim=self.box_dim, sigmoid_on=self.sigmoid_on)


def _init_params(key, input_size, box_dim=4):
    """Deterministic init matching OverlapOutputLayers.__init__:
       overlap_prob.weight ~ N(0, 0.01), overlap_pred.weight ~ N(0, 0.001),
       biases = 0."""
    k1, k2 = jax.random.split(key)
    w_prob = 0.01 * jax.random.normal(k1, (1, input_size), dtype=jnp.float32)
    b_prob = jnp.zeros((1,), dtype=jnp.float32)
    w_pred = 0.001 * jax.random.normal(k2, (box_dim, input_size), dtype=jnp.float32)
    b_pred = jnp.zeros((box_dim,), dtype=jnp.float32)
    return w_prob, b_prob, w_pred, b_pred


if __name__ == "__main__":
    key = jax.random.PRNGKey(0)
    kx, kp, kx2 = jax.random.split(key, 3)

    # Small shapes consistent with the module: input_size = (C, H, W) = (4, 16, 16)
    N, C, H, W = 8, 4, 16, 16
    box_dim = 4
    D = C * H * W

    x = jax.random.normal(kx, (N, C, H, W), dtype=jnp.float32)
    w_prob, b_prob, w_pred, b_pred = _init_params(kp, D, box_dim)

    # Parameters fused once, reused across calls.
    head = OverlapHead(w_prob, b_prob, w_pred, b_pred, sigmoid_on=True)

    probs, deltas = head(x)
    jax.block_until_ready((probs, deltas))
    assert probs.shape == (N, 1) and deltas.shape == (N, box_dim)

    # Reference check in plain JAX (same math as the PyTorch forward).
    x_flat = x.reshape(N, -1)
    logits_ref = x_flat @ w_prob.T + b_prob
    ref_probs = jax.nn.sigmoid(logits_ref)
    ref_deltas = x_flat @ w_pred.T + b_pred
    np.testing.assert_allclose(np.asarray(probs), np.asarray(ref_probs), rtol=1e-5, atol=1e-5)
    np.testing.assert_allclose(np.asarray(deltas), np.asarray(ref_deltas), rtol=1e-5, atol=1e-5)

    # sigmoid_on=False path returns raw logits for the confidence column
    # (reuses the already-fused parameters).
    raw_probs, deltas2 = overlap_forward(x, head.w_fused, head.b_fused,
                                         box_dim=head.box_dim, sigmoid_on=False)
    jax.block_until_ready((raw_probs, deltas2))
    np.testing.assert_allclose(np.asarray(raw_probs), np.asarray(logits_ref), rtol=1e-5, atol=1e-5)
    np.testing.assert_allclose(np.asarray(deltas2), np.asarray(ref_deltas), rtol=1e-5, atol=1e-5)

    # Ragged proposal count (no host-side pad; exercises the partial last block
    # and a multi-step parallel grid), pre-flattened input.
    N2 = 50
    x2 = jax.random.normal(kx2, (N2, D), dtype=jnp.float32)
    p2, d2 = head(x2)
    jax.block_until_ready((p2, d2))
    ref_p2 = jax.nn.sigmoid(x2 @ w_prob.T + b_prob)
    ref_d2 = x2 @ w_pred.T + b_pred
    np.testing.assert_allclose(np.asarray(p2), np.asarray(ref_p2), rtol=1e-5, atol=1e-5)
    np.testing.assert_allclose(np.asarray(d2), np.asarray(ref_d2), rtol=1e-5, atol=1e-5)

    # bf16 activation path (halved HBM traffic); loose tolerance vs f32 ref.
    head_bf16 = OverlapHead(w_prob, b_prob, w_pred, b_pred, sigmoid_on=True,
                            dtype=jnp.bfloat16)
    pb, db = head_bf16(x.astype(jnp.bfloat16))
    jax.block_until_ready((pb, db))
    np.testing.assert_allclose(np.asarray(pb, dtype=np.float32), np.asarray(ref_probs),
                               rtol=0.0, atol=2e-2)
    np.testing.assert_allclose(np.asarray(db, dtype=np.float32), np.asarray(ref_deltas),
                               rtol=0.0, atol=2e-2)

    print("KERNEL_OK")
</pallas_src>

<mosaic_0001>
module attributes {stable_mosaic.version = 11 : i64} {
  func.func @_overlap_fused_kernel(%arg0: i32, %arg1: memref<8x1024xf32, #tpu.memory_space<vmem>>, %arg2: memref<1024x8xf32, #tpu.memory_space<vmem>>, %arg3: memref<1x8xf32, #tpu.memory_space<vmem>>, %arg4: memref<8x8xf32, #tpu.memory_space<vmem>>) attributes {dimension_semantics = [#tpu.dimension_semantics<parallel>], iteration_bounds = array<i64: 1>, scalar_prefetch = 0 : i64, scratch_operands = 0 : i64, tpu.core_type = #tpu.core_type<tc>, window_params = [{transform_indices = @transform_0, window_bounds = array<i64: 8, 1024>}, {pipeline_mode = #tpu.pipeline_mode<synchronous>, transform_indices = @transform_1, window_bounds = array<i64: 1024, 8>}, {pipeline_mode = #tpu.pipeline_mode<synchronous>, transform_indices = @transform_2, window_bounds = array<i64: 1, 8>}, {transform_indices = @transform_3, window_bounds = array<i64: 8, 8>}]} {
    %c0 = arith.constant 0 : index
    %c0_0 = arith.constant 0 : index
    %0 = vector.load %arg1[%c0, %c0_0] : memref<8x1024xf32, #tpu.memory_space<vmem>>, vector<8x1024xf32>
    %c0_1 = arith.constant 0 : index
    %c0_2 = arith.constant 0 : index
    %1 = vector.load %arg2[%c0_1, %c0_2] : memref<1024x8xf32, #tpu.memory_space<vmem>>, vector<1024x8xf32>
    %cst = arith.constant dense<0.000000e+00> : vector<8x8xf32>
    %2 = tpu.matmul %0, %1, %cst {dimension_numbers = #tpu.dot_dimension_numbers<[1], [0], [0], [1], [0, 0, 1, 1], [], []>} : vector<8x1024xf32>, vector<1024x8xf32>, vector<8x8xf32> -> vector<8x8xf32>
    %c0_3 = arith.constant 0 : index
    %c0_4 = arith.constant 0 : index
    %3 = vector.load %arg3[%c0_3, %c0_4] : memref<1x8xf32, #tpu.memory_space<vmem>>, vector<1x8xf32>
    %4 = vector.broadcast %3 : vector<1x8xf32> to vector<8x8xf32>
    %5 = arith.addf %2, %4 : vector<8x8xf32>
    %c0_5 = arith.constant 0 : index
    %c0_6 = arith.constant 0 : index
    %6 = vector.load %arg4[%c0_5, %c0_6] : memref<8x8xf32, #tpu.memory_space<vmem>>, vector<8x8xf32>
    tpu.vector_store %arg4[%c0_5, %c0_6], %5 {strides = array<i32>} : memref<8x8xf32, #tpu.memory_space<vmem>>, vector<8x8xf32>,
    return
  }
  func.func @transform_0(%arg0: i32) -> (i32, i32) {
    %c0_i32 = arith.constant 0 : i32
    %c0_i32_0 = arith.constant 0 : i32
    return %arg0, %c0_i32 : i32, i32
  }
  func.func @transform_1(%arg0: i32) -> (i32, i32) {
    %c0_i32 = arith.constant 0 : i32
    %c0_i32_0 = arith.constant 0 : i32
    %c0_i32_1 = arith.constant 0 : i32
    return %c0_i32, %c0_i32_0 : i32, i32
  }
  func.func @transform_2(%arg0: i32) -> (i32, i32) {
    %c0_i32 = arith.constant 0 : i32
    %c0_i32_0 = arith.constant 0 : i32
    %c0_i32_1 = arith.constant 0 : i32
    return %c0_i32, %c0_i32_0 : i32, i32
  }
  func.func @transform_3(%arg0: i32) -> (i32, i32) {
    %c0_i32 = arith.constant 0 : i32
    %c0_i32_0 = arith.constant 0 : i32
    return %arg0, %c0_i32 : i32, i32
  }
}

</mosaic_0001>

<bundles_post_ra>
// kernel: overlap_forward.1
= control target key start
LH: loop header
LB: loop body
LE: loop exit
PB: predicated region body
PF: predicated region fallthrough
CT: control target
= control target key end

     0   :  { %vm437_vm0 = vcmask 64512   ;;  %s1146_s1 = inlined_call_operand.vmem [shape: f32[1024,8], index: 1, kind: input, shape index: {}]   ;;  %s1147_s0 = inlined_call_operand.vmem [shape: f32[8,1024], index: 0, kind: input, shape index: {}]   ;;  %s1148_s2 = inlined_call_operand.vmem [shape: f32[1,8], index: 2, kind: input, shape index: {}]   ;;  %s1149_s3 = inlined_call_operand.vmem [shape: f32[8,8], index: 3, kind: output, shape index: {}]  }
   0x1   :  { %v38_v0 = vld [vmem:[%s1146_s1 + $0x80] sm:$0xff]  ;;  %v39_v1 = vld [vmem:[%s1146_s1 + $0x88] sm:$0xff]  ;;  %v40_v11 = vld [vmem:[%s1146_s1 + $0x90] sm:$0xff] }
   0x2   :  { %v22_v2 = vld [vmem:[%s1146_s1] sm:$0xff]  ;;  %v584_v3 = vpack.c.bf16 %v39_v1, %v38_v0  ;;  %v23_v4 = vld [vmem:[%s1146_s1 + $0x8] sm:$0xff]  ;;  %v41_v13 = vld [vmem:[%s1146_s1 + $0x98] sm:$0xff] }
   0x3   :  { %v70_v5 = vld [vmem:[%s1146_s1 + $0x180] sm:$0xff]  ;;  %v71_v6 = vld [vmem:[%s1146_s1 + $0x188] sm:$0xff]  ;;  %v586_v7 = vpack.c.bf16 %v23_v4, %v22_v2  ;;  %v24_v14 = vld [vmem:[%s1146_s1 + $0x10] sm:$0xff]  ;;  %v588_v16 = vpack.c.bf16 %v41_v13, %v40_v11 }
   0x4   :  { %v616_v8 = vpack.c.bf16 %v71_v6, %v70_v5  ;;  %v54_v9 = vld [vmem:[%s1146_s1 + $0x100] sm:$0xff]  ;;  %v55_v10 = vld [vmem:[%s1146_s1 + $0x108] sm:$0xff]  ;;  %585 = vmatprep.subr.bf16.mxu0 %v584_v3  ;;  %v25_v15 = vld [vmem:[%s1146_s1 + $0x18] sm:$0xff] }
   0x5   :  { %v618_v12 = vpack.c.bf16 %v55_v10, %v54_v9  ;;  %587 = vmatpush3.bf16.msra.mxu0 %v586_v7  ;;  %v590_v17 = vpack.c.bf16 %v25_v15, %v24_v14  ;;  %v72_v18 = vld [vmem:[%s1146_s1 + $0x190] sm:$0xff]  ;;  %v73_v19 = vld [vmem:[%s1146_s1 + $0x198] sm:$0xff]  ;;  %v42_v23 = vld [vmem:[%s1146_s1 + $0xa0] sm:$0xff] }
   0x6   :  { %617 = vmatprep.subr.bf16.mxu1 %v616_v8  ;;  %v56_v20 = vld [vmem:[%s1146_s1 + $0x110] sm:$0xff]  ;;  %v620_v21 = vpack.c.bf16 %v73_v19, %v72_v18  ;;  %v57_v22 = vld [vmem:[%s1146_s1 + $0x118] sm:$0xff]  ;;  %v43_v24 = vld [vmem:[%s1146_s1 + $0xa8] sm:$0xff]  ;;  %589 = vmatprep.subr.bf16.mxu0 %v588_v16 }
   0x7   :  { %619 = vmatpush3.bf16.msra.mxu1 %v618_v12  ;;  %v622_v25 = vpack.c.bf16 %v57_v22, %v56_v20  ;;  %v592_v26 = vpack.c.bf16 %v43_v24, %v42_v23  ;;  %v26_v27 = vld [vmem:[%s1146_s1 + $0x20] sm:$0xff]  ;;  %v27_v28 = vld [vmem:[%s1146_s1 + $0x28] sm:$0xff]  ;;  %v44_v35 = vld [vmem:[%s1146_s1 + $0xb0] sm:$0xff] }
   0x8   :  { %v74_v29 = vld [vmem:[%s1146_s1 + $0x1a0] sm:$0xff]  ;;  %621 = vmatprep.subr.bf16.mxu1 %v620_v21  ;;  %v75_v30 = vld [vmem:[%s1146_s1 + $0x1a8] sm:$0xff]  ;;  %v594_v33 = vpack.c.bf16 %v27_v28, %v26_v27  ;;  %v45_v36 = vld [vmem:[%s1146_s1 + $0xb8] sm:$0xff] }
   0x9   :  { %v58_v31 = vld [vmem:[%s1146_s1 + $0x120] sm:$0xff]  ;;  %v59_v32 = vld [vmem:[%s1146_s1 + $0x128] sm:$0xff]  ;;  %591 = vmatpush3.bf16.msra.mxu0 %v590_v17  ;;  %v624_v34 = vpack.c.bf16 %v75_v30, %v74_v29  ;;  %v28_v37 = vld [vmem:[%s1146_s1 + $0x30] sm:$0xff]  ;;  %v596_v39 = vpack.c.bf16 %v45_v36, %v44_v35 }
   0xa   :  { %593 = vmatprep.subr.bf16.mxu0 %v592_v26  ;;  %v626_v38 = vpack.c.bf16 %v59_v32, %v58_v31  ;;  %v29_v40 = vld [vmem:[%s1146_s1 + $0x38] sm:$0xff]  ;;  %v76_v41 = vld [vmem:[%s1146_s1 + $0x1b0] sm:$0xff]  ;;  %v46_v46 = vld [vmem:[%s1146_s1 + $0xc0] sm:$0xff] }
   0xb   :  { %623 = vmatpush3.bf16.msra.mxu1 %v622_v25  ;;  %v77_v42 = vld [vmem:[%s1146_s1 + $0x1b8] sm:$0xff]  ;;  %v60_v44 = vld [vmem:[%s1146_s1 + $0x130] sm:$0xff]  ;;  %v47_v47 = vld [vmem:[%s1146_s1 + $0xc8] sm:$0xff]  ;;  %v598_v48 = vpack.c.bf16 %v29_v40, %v28_v37 }
   0xc   :  { %625 = vmatprep.subr.bf16.mxu1 %v624_v34  ;;  %v628_v43 = vpack.c.bf16 %v77_v42, %v76_v41  ;;  %v61_v45 = vld [vmem:[%s1146_s1 + $0x138] sm:$0xff]  ;;  %v78_v49 = vld [vmem:[%s1146_s1 + $0x1c0] sm:$0xff]  ;;  %v79_v50 = vld [vmem:[%s1146_s1 + $0x1c8] sm:$0xff]  ;;  %v600_v52 = vpack.c.bf16 %v47_v47, %v46_v46 }
   0xd   :  { %595 = vmatpush3.bf16.msra.mxu0 %v594_v33  ;;  %v630_v51 = vpack.c.bf16 %v61_v45, %v60_v44  ;;  %v30_v53 = vld [vmem:[%s1146_s1 + $0x40] sm:$0xff]  ;;  %v31_v54 = vld [vmem:[%s1146_s1 + $0x48] sm:$0xff]  ;;  %v632_v56 = vpack.c.bf16 %v79_v50, %v78_v49  ;;  %v48_v58 = vld [vmem:[%s1146_s1 + $0xd0] sm:$0xff] }
   0xe   :  { %597 = vmatprep.subr.bf16.mxu0 %v596_v39  ;;  %v62_v55 = vld [vmem:[%s1146_s1 + $0x140] sm:$0xff]  ;;  %v63_v57 = vld [vmem:[%s1146_s1 + $0x148] sm:$0xff]  ;;  %v49_v59 = vld [vmem:[%s1146_s1 + $0xd8] sm:$0xff]  ;;  %v602_v62 = vpack.c.bf16 %v31_v54, %v30_v53 }
   0xf   :  { %627 = vmatpush3.bf16.msra.mxu1 %v626_v38  ;;  %v80_v60 = vld [vmem:[%s1146_s1 + $0x1d0] sm:$0xff]  ;;  %v81_v61 = vld [vmem:[%s1146_s1 + $0x1d8] sm:$0xff]  ;;  %v634_v63 = vpack.c.bf16 %v63_v57, %v62_v55  ;;  %v604_v0 = vpack.c.bf16 %v49_v59, %v48_v58  ;;  %v50_v6 = vld [vmem:[%s1146_s1 + $0xe0] sm:$0xff] }
  0x10   :  { %629 = vmatprep.subr.bf16.mxu1 %v628_v43  ;;  %v32_v1 = vld [vmem:[%s1146_s1 + $0x50] sm:$0xff]  ;;  %v33_v2 = vld [vmem:[%s1146_s1 + $0x58] sm:$0xff]  ;;  %v636_v4 = vpack.c.bf16 %v81_v61, %v80_v60  ;;  %v51_v7 = vld [vmem:[%s1146_s1 + $0xe8] sm:$0xff] }
  0x11   :  { %599 = vmatpush3.bf16.msra.mxu0 %v598_v48  ;;  %v64_v3 = vld [vmem:[%s1146_s1 + $0x150] sm:$0xff]  ;;  %v65_v5 = vld [vmem:[%s1146_s1 + $0x158] sm:$0xff]  ;;  %v82_v8 = vld [vmem:[%s1146_s1 + $0x1e0] sm:$0xff]  ;;  %v606_v10 = vpack.c.bf16 %v33_v2, %v32_v1  ;;  %v608_v14 = vpack.c.bf16 %v51_v7, %v50_v6 }
  0x12   :  { %601 = vmatprep.subr.bf16.mxu0 %v600_v52  ;;  %v83_v9 = vld [vmem:[%s1146_s1 + $0x1e8] sm:$0xff]  ;;  %v34_v11 = vld [vmem:[%s1146_s1 + $0x60] sm:$0xff]  ;;  %v638_v13 = vpack.c.bf16 %v65_v5, %v64_v3  ;;  %v52_v19 = vld [vmem:[%s1146_s1 + $0xf0] sm:$0xff] }
  0x13   :  { %631 = vmatpush3.bf16.msra.mxu1 %v630_v51  ;;  %v35_v12 = vld [vmem:[%s1146_s1 + $0x68] sm:$0xff]  ;;  %v66_v15 = vld [vmem:[%s1146_s1 + $0x160] sm:$0xff]  ;;  %v640_v18 = vpack.c.bf16 %v83_v9, %v82_v8  ;;  %v53_v20 = vld [vmem:[%s1146_s1 + $0xf8] sm:$0xff] }
  0x14   :  { %633 = vmatprep.subr.bf16.mxu1 %v632_v56  ;;  %v67_v16 = vld [vmem:[%s1146_s1 + $0x168] sm:$0xff]  ;;  %v17_v21 = vld [vmem:[%s1147_s0 + $0x18] sm:$0xff]  ;;  %v84_v22 = vld [vmem:[%s1146_s1 + $0x1f0] sm:$0xff]  ;;  %v610_v24 = vpack.c.bf16 %v35_v12, %v34_v11  ;;  %v612_v26 = vpack.c.bf16 %v53_v20, %v52_v19 }
  0x15   :  { %603 = vmatpush3.bf16.msra.mxu0 %v602_v62  ;;  %v15_v17 = vld [vmem:[%s1147_s0 + $0x8] sm:$0xff]  ;;  %v85_v23 = vld [vmem:[%s1146_s1 + $0x1f8] sm:$0xff]  ;;  %291 = vmatprep.mubr.f32.mxu1 %v17_v21  ;;  %v642_v25 = vpack.c.bf16 %v67_v16, %v66_v15  ;;  %v36_v27 = vld [vmem:[%s1146_s1 + $0x70] sm:$0xff] }
  0x16   :  { %605 = vmatprep.subr.bf16.mxu0 %v604_v0  ;;  %221 = vmatprep.mubr.f32.mxu0 %v15_v17  ;;  %v37_v28 = vld [vmem:[%s1146_s1 + $0x78] sm:$0xff]  ;;  %v68_v29 = vld [vmem:[%s1146_s1 + $0x170] sm:$0xff]  ;;  %v644_v30 = vpack.c.bf16 %v85_v23, %v84_v22  ;;  %v102_v32 = vld [vmem:[%s1146_s1 + $0x280] sm:$0xff] }
  0x17   :  { %635 = vmatpush3.bf16.msra.mxu1 %v634_v63  ;;  %v69_v31 = vld [vmem:[%s1146_s1 + $0x178] sm:$0xff]  ;;  %v103_v33 = vld [vmem:[%s1146_s1 + $0x288] sm:$0xff]  ;;  %v134_v34 = vld [vmem:[%s1146_s1 + $0x380] sm:$0xff]  ;;  %v614_v36 = vpack.c.bf16 %v37_v28, %v36_v27 }
  0x18   :  { %637 = vmatprep.subr.bf16.mxu1 %v636_v4  ;;  %v135_v35 = vld [vmem:[%s1146_s1 + $0x388] sm:$0xff]  ;;  %v646_v37 = vpack.c.bf16 %v69_v31, %v68_v29  ;;  %v648_v38 = vpack.c.bf16 %v103_v33, %v102_v32  ;;  %v86_v39 = vld [vmem:[%s1146_s1 + $0x200] sm:$0xff]  ;;  %v104_v44 = vld [vmem:[%s1146_s1 + $0x290] sm:$0xff] }
  0x19   :  { %607 = vmatpush3.bf16.msra.mxu0 %v606_v10  ;;  %v87_v40 = vld [vmem:[%s1146_s1 + $0x208] sm:$0xff]  ;;  %v118_v41 = vld [vmem:[%s1146_s1 + $0x300] sm:$0xff]  ;;  %v680_v42 = vpack.c.bf16 %v135_v35, %v134_v34  ;;  %v105_v45 = vld [vmem:[%s1146_s1 + $0x298] sm:$0xff] }
  0x1a   :  { %609 = vmatprep.subr.bf16.mxu0 %v608_v14  ;;  %v119_v43 = vld [vmem:[%s1146_s1 + $0x308] sm:$0xff]  ;;  %v136_v46 = vld [vmem:[%s1146_s1 + $0x390] sm:$0xff]  ;;  %v137_v47 = vld [vmem:[%s1146_s1 + $0x398] sm:$0xff]  ;;  %v650_v49 = vpack.c.bf16 %v87_v40, %v86_v39  ;;  %v652_v52 = vpack.c.bf16 %v105_v45, %v104_v44 }
  0x1b   :  { %639 = vmatpush3.bf16.msra.mxu1 %v638_v13  ;;  %v14_v48 = vld [vmem:[%s1147_s0] sm:$0xff]  ;;  %v16_v50 = vld [vmem:[%s1147_s0 + $0x10] sm:$0xff]  ;;  %v682_v51 = vpack.c.bf16 %v119_v43, %v118_v41  ;;  %v89_v54 = vld [vmem:[%s1146_s1 + $0x218] sm:$0xff]  ;;  %v684_v56 = vpack.c.bf16 %v137_v47, %v136_v46 }
  0x1c   :  { %641 = vmatprep.subr.bf16.mxu1 %v640_v18  ;;  %v88_v53 = vld [vmem:[%s1146_s1 + $0x210] sm:$0xff]  ;;  %v121_v57 = vld [vmem:[%s1146_s1 + $0x318] sm:$0xff]  ;;  %v106_v58 = vld [vmem:[%s1146_s1 + $0x2a0] sm:$0xff] }
  0x1d   :  { %611 = vmatpush3.bf16.msra.mxu0 %v610_v24  ;;  %v120_v55 = vld [vmem:[%s1146_s1 + $0x310] sm:$0xff]  ;;  %v107_v59 = vld [vmem:[%s1146_s1 + $0x2a8] sm:$0xff]  ;;  %v138_v60 = vld [vmem:[%s1146_s1 + $0x3a0] sm:$0xff]  ;;  %v654_v62 = vpack.c.bf16 %v89_v54, %v88_v53 }
  0x1e   :  { %613 = vmatprep.subr.bf16.mxu0 %v612_v26  ;;  %v139_v61 = vld [vmem:[%s1146_s1 + $0x3a8] sm:$0xff]  ;;  %v686_v63 = vpack.c.bf16 %v121_v57, %v120_v55  ;;  %v656_v0 = vpack.c.bf16 %v107_v59, %v106_v58  ;;  %v90_v1 = vld [vmem:[%s1146_s1 + $0x220] sm:$0xff]  ;;  %v108_v6 = vld [vmem:[%s1146_s1 + $0x2b0] sm:$0xff] }
  0x1f   :  { %643 = vmatpush3.bf16.msra.mxu1 %v642_v25  ;;  %v91_v2 = vld [vmem:[%s1146_s1 + $0x228] sm:$0xff]  ;;  %v122_v3 = vld [vmem:[%s1146_s1 + $0x320] sm:$0xff]  ;;  %v688_v4 = vpack.c.bf16 %v139_v61, %v138_v60  ;;  %v109_v7 = vld [vmem:[%s1146_s1 + $0x2b8] sm:$0xff] }
  0x20   :  { %645 = vmatprep.subr.bf16.mxu1 %v644_v30  ;;  %v123_v5 = vld [vmem:[%s1146_s1 + $0x328] sm:$0xff]  ;;  %v140_v8 = vld [vmem:[%s1146_s1 + $0x3b0] sm:$0xff]  ;;  %v141_v9 = vld [vmem:[%s1146_s1 + $0x3b8] sm:$0xff]  ;;  %v658_v10 = vpack.c.bf16 %v91_v2, %v90_v1  ;;  %v660_v12 = vpack.c.bf16 %v109_v7, %v108_v6 }
  0x21   :  { %615 = vmatpush3.bf16.msra.mxu0 %v614_v36  ;;  %v690_v11 = vpack.c.bf16 %v123_v5, %v122_v3  ;;  %v92_v13 = vld [vmem:[%s1146_s1 + $0x230] sm:$0xff]  ;;  %v93_v14 = vld [vmem:[%s1146_s1 + $0x238] sm:$0xff]  ;;  %v692_v16 = vpack.c.bf16 %v141_v9, %v140_v8  ;;  %v110_v18 = vld [vmem:[%s1146_s1 + $0x2c0] sm:$0xff] }
  0x22   :  { %649 = vmatprep.subr.bf16.mxu0 %v648_v38  ;;  %v124_v15 = vld [vmem:[%s1146_s1 + $0x330] sm:$0xff]  ;;  %v125_v17 = vld [vmem:[%s1146_s1 + $0x338] sm:$0xff]  ;;  %v111_v19 = vld [vmem:[%s1146_s1 + $0x2c8] sm:$0xff]  ;;  %v662_v22 = vpack.c.bf16 %v93_v14, %v92_v13 }
  0x23   :  { %647 = vmatpush3.bf16.msra.mxu1 %v646_v37  ;;  %v142_v20 = vld [vmem:[%s1146_s1 + $0x3c0] sm:$0xff]  ;;  %v143_v21 = vld [vmem:[%s1146_s1 + $0x3c8] sm:$0xff]  ;;  %v21_v24 = vld [vmem:[%s1147_s0 + $0x38] sm:$0xff]  ;;  %v694_v25 = vpack.c.bf16 %v125_v17, %v124_v15  ;;  %v664_v26 = vpack.c.bf16 %v111_v19, %v110_v18 }
  0x24   :  { %681 = vmatprep.subr.bf16.mxu1 %v680_v42  ;;  %222 = vmatmul.mubr.f32.vlgmr.msra.gmra.mrb[0].mxu0 %v14_v48  ;;  %v19_v23 = vld [vmem:[%s1147_s0 + $0x28] sm:$0xff]  ;;  %v94_v27 = vld [vmem:[%s1146_s1 + $0x240] sm:$0xff]  ;;  %v696_v30 = vpack.c.bf16 %v143_v21, %v142_v20  ;;  %v112_v32 = vld [vmem:[%s1146_s1 + $0x2d0] sm:$0xff] }
  0x25   :  { %651 = vmatpush3.bf16.msra.mxu0 %v650_v49  ;;  %v95_v28 = vld [vmem:[%s1146_s1 + $0x248] sm:$0xff]  ;;  %v126_v29 = vld [vmem:[%s1146_s1 + $0x340] sm:$0xff]  ;;  %v113_v33 = vld [vmem:[%s1146_s1 + $0x2d8] sm:$0xff]  ;;  %361 = vmatprep.mubr.f32.mxu0 %v19_v23 }
  0x26   :  { %292 = vmatmul.mubr.f32.vlgmr.msra.gmra.mrb[0].mxu1 %v16_v50  ;;  %653 = vmatprep.subr.bf16.mxu0 %v652_v52  ;;  %v127_v31 = vld [vmem:[%s1146_s1 + $0x348] sm:$0xff]  ;;  %v144_v34 = vld [vmem:[%s1146_s1 + $0x3d0] sm:$0xff]  ;;  %v145_v35 = vld [vmem:[%s1146_s1 + $0x3d8] sm:$0xff]  ;;  %v666_v36 = vpack.c.bf16 %v95_v28, %v94_v27  ;;  %v668_v38 = vpack.c.bf16 %v113_v33, %v112_v32 }
  0x27   :  { %683 = vmatpush3.bf16.msra.mxu1 %v682_v51  ;;  %431 = vmatprep.mubr.f32.mxu1 %v21_v24  ;;  %v698_v37 = vpack.c.bf16 %v127_v31, %v126_v29  ;;  %v96_v39 = vld [vmem:[%s1146_s1 + $0x250] sm:$0xff]  ;;  %v97_v40 = vld [vmem:[%s1146_s1 + $0x258] sm:$0xff]  ;;  %v700_v42 = vpack.c.bf16 %v145_v35, %v144_v34  ;;  %v114_v44 = vld [vmem:[%s1146_s1 + $0x2e0] sm:$0xff] }
  0x28   :  { %685 = vmatprep.subr.bf16.mxu1 %v684_v56  ;;  %v128_v41 = vld [vmem:[%s1146_s1 + $0x350] sm:$0xff]  ;;  %v129_v43 = vld [vmem:[%s1146_s1 + $0x358] sm:$0xff]  ;;  %v115_v45 = vld [vmem:[%s1146_s1 + $0x2e8] sm:$0xff]  ;;  %v670_v48 = vpack.c.bf16 %v97_v40, %v96_v39 }
  0x29   :  { %655 = vmatpush3.bf16.msra.mxu0 %v654_v62  ;;  %v146_v46 = vld [vmem:[%s1146_s1 + $0x3e0] sm:$0xff]  ;;  %v147_v47 = vld [vmem:[%s1146_s1 + $0x3e8] sm:$0xff]  ;;  %v702_v49 = vpack.c.bf16 %v129_v43, %v128_v41  ;;  %v672_v50 = vpack.c.bf16 %v115_v45, %v114_v44  ;;  %v116_v56 = vld [vmem:[%s1146_s1 + $0x2f0] sm:$0xff] }
  0x2a   :  { %657 = vmatprep.subr.bf16.mxu0 %v656_v0  ;;  %v98_v51 = vld [vmem:[%s1146_s1 + $0x260] sm:$0xff]  ;;  %v99_v52 = vld [vmem:[%s1146_s1 + $0x268] sm:$0xff]  ;;  %v704_v54 = vpack.c.bf16 %v147_v47, %v146_v46  ;;  %v117_v57 = vld [vmem:[%s1146_s1 + $0x2f8] sm:$0xff] }
  0x2b   :  { %687 = vmatpush3.bf16.msra.mxu1 %v686_v63  ;;  %v130_v53 = vld [vmem:[%s1146_s1 + $0x360] sm:$0xff]  ;;  %v131_v55 = vld [vmem:[%s1146_s1 + $0x368] sm:$0xff]  ;;  %v148_v58 = vld [vmem:[%s1146_s1 + $0x3f0] sm:$0xff]  ;;  %v674_v60 = vpack.c.bf16 %v99_v52, %v98_v51  ;;  %v676_v62 = vpack.c.bf16 %v117_v57, %v116_v56 }
  0x2c   :  { %689 = vmatprep.subr.bf16.mxu1 %v688_v4  ;;  %v149_v59 = vld [vmem:[%s1146_s1 + $0x3f8] sm:$0xff]  ;;  %v706_v61 = vpack.c.bf16 %v131_v55, %v130_v53  ;;  %v100_v63 = vld [vmem:[%s1146_s1 + $0x270] sm:$0xff]  ;;  %v18_v6 = vld [vmem:[%s1147_s0 + $0x20] sm:$0xff] }
  0x2d   :  { %659 = vmatpush3.bf16.msra.mxu0 %v658_v10  ;;  %v101_v0 = vld [vmem:[%s1146_s1 + $0x278] sm:$0xff]  ;;  %v708_v1 = vpack.c.bf16 %v149_v59, %v148_v58  ;;  %v132_v2 = vld [vmem:[%s1146_s1 + $0x370] sm:$0xff]  ;;  %v443_v9 = vld [vmem:[%s1148_s2] ss:$0 sm:$0xff] }
  0x2e   :  { %661 = vmatprep.subr.bf16.mxu0 %v660_v12  ;;  %v133_v3 = vld [vmem:[%s1146_s1 + $0x378] sm:$0xff]  ;;  %v678_v4 = vpack.c.bf16 %v101_v0, %v100_v63  ;;  %v20_v7 = vld [vmem:[%s1147_s0 + $0x30] sm:$0xff] }
  0x2f   :  { %691 = vmatpush3.bf16.msra.mxu1 %v690_v11  ;;  %v710_v5 = vpack.c.bf16 %v133_v3, %v132_v2 }
  0x30   :  { %693 = vmatprep.subr.bf16.mxu1 %v692_v16 }
  0x31   :  { %663 = vmatpush3.bf16.msra.mxu0 %v662_v22 }
  0x32   :  { %665 = vmatprep.subr.bf16.mxu0 %v664_v26 }
  0x33   :  { %695 = vmatpush3.bf16.msra.mxu1 %v694_v25 }
  0x34   :  { %697 = vmatprep.subr.bf16.mxu1 %v696_v30 }
  0x35   :  { %667 = vmatpush3.bf16.msra.mxu0 %v666_v36 }
  0x36   :  { %669 = vmatprep.subr.bf16.mxu0 %v668_v38 }
  0x37   :  { %699 = vmatpush3.bf16.msra.mxu1 %v698_v37 }
  0x38   :  { %701 = vmatprep.subr.bf16.mxu1 %v700_v42 }
  0x39   :  { %671 = vmatpush3.bf16.msra.mxu0 %v670_v48 }
  0x3a   :  { %673 = vmatprep.subr.bf16.mxu0 %v672_v50 }
  0x3b   :  { %703 = vmatpush3.bf16.msra.mxu1 %v702_v49 }
  0x3c   :  { %705 = vmatprep.subr.bf16.mxu1 %v704_v54 }
  0x3d   :  { %675 = vmatpush3.bf16.msra.mxu0 %v674_v60 }
  0x3e   :  { %677 = vmatprep.subr.bf16.mxu0 %v676_v62 }
  0x3f   :  { %707 = vmatpush3.bf16.msra.mxu1 %v706_v61 }
  0x40   :  { %709 = vmatprep.subr.bf16.mxu1 %v708_v1 }
  0x41   :  { %679 = vmatpush3.bf16.msra.mxu0 %v678_v4 }
  0x43   :  { %711 = vmatpush3.bf16.msra.mxu1 %v710_v5 }
  0x44   :  { %362 = vmatmul.mubr.f32.vlgmr.msra.gmra.mrb[2].mxu0 %v18_v6 }
  0x46   :  { %432 = vmatmul.mubr.f32.vlgmr.msra.gmra.mrb[2].mxu1 %v20_v7 }
  0xf7   :  { %v476_v8 = vpop.f32.mrb[0].mxu0 }
  0xf8   :  { %v477_v10 = vpop.f32.mrb[1].mxu0 }
  0xf9   :  { %v511_v11 = vpop.f32.mrb[0].mxu1  ;;  %v478_v12 = vadd.f32 %v477_v10, %v476_v8 }
  0xfa   :  { %v512_v13 = vpop.f32.mrb[1].mxu1 }
  0xfb   :  { %v513_v14 = vadd.f32 %v512_v13, %v511_v11  ;;  %v224_v15 = vadd.f32 %v478_v12, %v443_v9 }
  0xfd   :  { %v294_v16 = vadd.f32 %v513_v14, %v224_v15 }
 0x117   :  { %v546_v17 = vpop.f32.mrb[2].mxu0 }
 0x118   :  { %v547_v18 = vpop.f32.mrb[3].mxu0 }
 0x119   :  { %v581_v19 = vpop.f32.mrb[2].mxu1  ;;  %v548_v20 = vadd.f32 %v547_v18, %v546_v17 }
 0x11a   :  { %v582_v21 = vpop.f32.mrb[3].mxu1 }
 0x11b   :  { %v583_v22 = vadd.f32 %v582_v21, %v581_v19  ;;  %v364_v23 = vadd.f32 %v548_v20, %v294_v16 }
 0x11d   :  { %v434_v24 = vadd.f32 %v583_v22, %v364_v23 }
 0x11f   :  { %438 = vst.msk [vmem:[%s1149_s3] sm:$0xff] %vm437_vm0, %v434_v24 }

</bundles_post_ra>
